<compile_context>
chip_gen: v7x
topology: tpu7x:2x2x1
jax: 0.10.0
libtpu: 0.0.40
codegen_flags: <defaults>
</compile_context>

<pallas_src>
import functools

import jax
import jax.numpy as jnp
from jax.experimental import pallas as pl
from jax.experimental.pallas import tpu as pltpu


def _round_up(x: int, m: int) -> int:
    return ((x + m - 1) // m) * m


# Plan tiling against the chip's actual per-core VMEM when available.
try:
    _VMEM_CAP = int(pltpu.get_tpu_info().vmem_capacity_bytes)
except Exception:  # conservative fallback (v7x per-core VMEM)
    _VMEM_CAP = 64 * (2 ** 20)
_VMEM_LIMIT = min(int(_VMEM_CAP * 3 // 4), 100 * (2 ** 20))   # scoped limit handed to Mosaic
_VMEM_BUDGET = int(_VMEM_LIMIT * 4 // 5)                      # what _pick_tile plans against


def _pick_tile(n_contrast: int, d_pad: int, streams_mask: bool) -> int:
    """Largest multiple-of-8 anchor-row tile fitting the VMEM budget (capped at 512)."""
    fixed = 2 * d_pad * n_contrast * 2            # resident bf16 contrast^T (double-buffered)
    fixed += 2 * n_contrast * 4                   # contrast group ids
    per_row = 2 * d_pad * 2                       # bf16 anchor rows (double-buffered)
    per_row += 6 * n_contrast * 4                 # f32 logits / exp / log_prob / mask intermediates
    if streams_mask:
        per_row += 2 * n_contrast * 4             # streamed positive-mask rows (fallback path)
    per_row += 8 * 4                              # per-row ids / counts / output vectors
    avail = _VMEM_BUDGET - fixed
    if avail < 8 * per_row:
        # TODO(synk): contrast set too large to keep resident in VMEM; needs a second grid
        # axis over n_contrast with an online (flash-style) log-sum-exp to scale further.
        return 8
    return max(8, min(512, (avail // per_row) // 8 * 8))


def _log_prob(logits, not_self):
    """Shared f32 epilogue: self-excluded log-softmax over the contrast (lane) axis."""
    row_max = jnp.max(logits, axis=1, keepdims=True)
    shifted = logits - row_max
    exp_shifted = jnp.where(not_self, jnp.exp(shifted), 0.0)
    log_denom = jnp.log(jnp.sum(exp_shifted, axis=1, keepdims=True))
    return shifted - log_denom


def _supcon_label_kernel(rowgrp_ref, anchor_ref, colgrp_ref, contrast_t_ref,
                         poscnt_ref, out_ref, *, inv_temp, scale):
    """Positive mask rebuilt in-kernel from per-row/per-column group ids."""
    i = pl.program_id(0)
    tm = anchor_ref.shape[0]
    n_contrast = contrast_t_ref.shape[1]

    # bf16 anchor (tm, D) @ bf16 contrast^T (D, n_contrast) -> f32 on the MXU.
    logits = jnp.dot(anchor_ref[...], contrast_t_ref[...],
                     preferred_element_type=jnp.float32) * inv_temp

    row_ids = i * tm + jax.lax.broadcasted_iota(jnp.int32, (tm, n_contrast), 0)
    col_ids = jax.lax.broadcasted_iota(jnp.int32, (tm, n_contrast), 1)
    not_self = row_ids != col_ids

    log_prob = _log_prob(logits, not_self)

    positives = jnp.logical_and(rowgrp_ref[...] == colgrp_ref[...], not_self)
    pos_sum = jnp.sum(jnp.where(positives, log_prob, 0.0), axis=1, keepdims=True)
    # NOTE: zero-positive rows divide by 0 -> NaN, matching the PyTorch reference.
    out_ref[...] = (-scale) * (pos_sum / poscnt_ref[...])


def _supcon_mask_kernel(anchor_ref, contrast_t_ref, posmask_ref, poscnt_ref,
                        out_ref, *, inv_temp, scale):
    """Fallback for an explicit user-provided contrastive mask (streamed per tile)."""
    i = pl.program_id(0)
    tm = anchor_ref.shape[0]
    n_contrast = contrast_t_ref.shape[1]

    logits = jnp.dot(anchor_ref[...], contrast_t_ref[...],
                     preferred_element_type=jnp.float32) * inv_temp

    row_ids = i * tm + jax.lax.broadcasted_iota(jnp.int32, (tm, n_contrast), 0)
    col_ids = jax.lax.broadcasted_iota(jnp.int32, (tm, n_contrast), 1)
    not_self = row_ids != col_ids

    log_prob = _log_prob(logits, not_self)

    pos_sum = jnp.sum(posmask_ref[...] * log_prob, axis=1, keepdims=True)
    out_ref[...] = (-scale) * (pos_sum / poscnt_ref[...])


def supcon_loss(features, labels=None, mask=None, *, temperature=0.07,
                contrast_mode='all', base_temperature=0.07,
                matmul_dtype=jnp.bfloat16):
    """Pallas TPU equivalent of SupConLoss.forward. Returns a scalar loss."""
    features = jnp.asarray(features)
    if features.ndim < 3:
        raise ValueError('`features` needs to be [bsz, n_views, ...],'
                         'at least 3 dimensions are required')
    if features.ndim > 3:
        features = features.reshape(features.shape[0], features.shape[1], -1)
    bsz, n_views, dim = features.shape

    if labels is not None and mask is not None:
        raise ValueError('Cannot define both `labels` and `mask`')

    contrast_count = n_views
    # torch.cat(torch.unbind(features, dim=1), dim=0): view-major stacking.
    contrast_feature = jnp.transpose(features, (1, 0, 2)).reshape(n_views * bsz, dim)
    if contrast_mode == 'one':
        anchor_feature = features[:, 0]
        anchor_count = 1
    elif contrast_mode == 'all':
        anchor_feature = contrast_feature
        anchor_count = contrast_count
    else:
        raise ValueError('Unknown mode: {}'.format(contrast_mode))

    n_anchor = anchor_count * bsz
    n_contrast = contrast_count * bsz

    use_labels = mask is None
    if use_labels:
        if labels is None:
            grp = jnp.arange(bsz, dtype=jnp.int32)          # SimCLR: each sample = own class
        else:
            labels = jnp.asarray(labels).reshape(-1)
            if labels.shape[0] != bsz:
                raise ValueError('Num of labels does not match num of features')
            grp = labels.astype(jnp.int32)
        col_grp = jnp.tile(grp, (contrast_count,)).reshape(1, n_contrast)
        row_grp = jnp.tile(grp, (anchor_count,))
        # Positive count per anchor row: same-group entries over all views, self excluded.
        same = (grp[:, None] == grp[None, :]).astype(jnp.float32)
        pos_cnt = contrast_count * jnp.sum(same, axis=1) - 1.0
        pos_cnt = jnp.tile(pos_cnt, (anchor_count,))
        tiled_mask = None
    else:
        base_mask = jnp.asarray(mask, dtype=jnp.float32)
        tiled_mask = jnp.tile(base_mask, (anchor_count, contrast_count))
        tiled_mask = tiled_mask * (1.0 - jnp.eye(n_anchor, n_contrast, dtype=jnp.float32))
        pos_cnt = jnp.sum(tiled_mask, axis=1)
        row_grp = col_grp = None

    # ---- padding / tiling -----------------------------------------------------------
    d_pad = _round_up(dim, 128)                       # feed the 128/256-deep MXU
    tm = _pick_tile(n_contrast, d_pad, streams_mask=not use_labels)
    tm = min(tm, _round_up(n_anchor, 8))              # small problems -> single step
    n_anchor_pad = _round_up(n_anchor, tm)
    grid = (n_anchor_pad // tm,)

    def _pad_rows(x, rows, fill=0):
        pad = rows - x.shape[0]
        if pad == 0:
            return x
        return jnp.pad(x, ((0, pad),) + ((0, 0),) * (x.ndim - 1), constant_values=fill)

    anchor = _pad_rows(anchor_feature.astype(matmul_dtype), n_anchor_pad)
    if d_pad != dim:
        anchor = jnp.pad(anchor, ((0, 0), (0, d_pad - dim)))
        contrast_feature = jnp.pad(contrast_feature, ((0, 0), (0, d_pad - dim)))
    contrast_t = jnp.transpose(contrast_feature.astype(matmul_dtype))   # (d_pad, n_contrast)

    pos_cnt = _pad_rows(pos_cnt.reshape(-1, 1).astype(jnp.float32), n_anchor_pad, fill=1.0)

    inv_temp = 1.0 / float(temperature)
    scale = float(temperature) / float(base_temperature)
    compiler_params = pltpu.CompilerParams(
        dimension_semantics=("parallel",),   # independent per-row outputs -> megacore-shardable
        vmem_limit_bytes=_VMEM_LIMIT,
    )
    out_shape = jax.ShapeDtypeStruct((n_anchor_pad, 1), jnp.float32)
    out_spec = pl.BlockSpec((tm, 1), lambda i: (i, 0))

    if use_labels:
        row_grp = _pad_rows(row_grp.reshape(-1, 1), n_anchor_pad, fill=-1)
        kernel = functools.partial(_supcon_label_kernel, inv_temp=inv_temp, scale=scale)
        per_row = pl.pallas_call(
            kernel,
            out_shape=out_shape,
            grid_spec=pltpu.PrefetchScalarGridSpec(
                num_scalar_prefetch=0,
                grid=grid,
                in_specs=[
                    pl.BlockSpec((tm, 1), lambda i: (i, 0)),              # row group ids
                    pl.BlockSpec((tm, d_pad), lambda i: (i, 0)),          # bf16 anchor rows
                    pl.BlockSpec((1, n_contrast), lambda i: (0, 0)),      # contrast group ids
                    pl.BlockSpec((d_pad, n_contrast), lambda i: (0, 0)),  # resident contrast^T
                    pl.BlockSpec((tm, 1), lambda i: (i, 0)),              # positive counts
                ],
                out_specs=out_spec,
            ),
            compiler_params=compiler_params,
        )(row_grp, anchor, col_grp, contrast_t, pos_cnt)
    else:
        tiled_mask = _pad_rows(tiled_mask, n_anchor_pad)
        kernel = functools.partial(_supcon_mask_kernel, inv_temp=inv_temp, scale=scale)
        per_row = pl.pallas_call(
            kernel,
            out_shape=out_shape,
            grid_spec=pltpu.PrefetchScalarGridSpec(
                num_scalar_prefetch=0,
                grid=grid,
                in_specs=[
                    pl.BlockSpec((tm, d_pad), lambda i: (i, 0)),          # bf16 anchor rows
                    pl.BlockSpec((d_pad, n_contrast), lambda i: (0, 0)),  # resident contrast^T
                    pl.BlockSpec((tm, n_contrast), lambda i: (i, 0)),     # streamed mask rows
                    pl.BlockSpec((tm, 1), lambda i: (i, 0)),              # positive counts
                ],
                out_specs=out_spec,
            ),
            compiler_params=compiler_params,
        )(anchor, contrast_t, tiled_mask, pos_cnt)

    # Final mean over real anchor rows (padded rows discarded) — O(n_anchor) XLA reduce.
    return jnp.mean(per_row[:n_anchor, 0])


def _reference(features, labels=None, mask=None, *, temperature=0.07,
               contrast_mode='all', base_temperature=0.07,
               matmul_dtype=jnp.float32):
    """Pure-JAX mirror of the PyTorch SupConLoss.forward.
    `matmul_dtype` controls the dtype fed to the anchor·contrast matmul (f32 accumulate),
    so the kernel (bf16 MXU inputs) can be checked at its own precision."""
    features = jnp.asarray(features, jnp.float32)
    bsz, n_views = features.shape[0], features.shape[1]
    features = features.reshape(bsz, n_views, -1)
    if labels is None and mask is None:
        mask = jnp.eye(bsz, dtype=jnp.float32)
    elif labels is not None:
        labels = jnp.asarray(labels).reshape(-1, 1)
        mask = (labels == labels.T).astype(jnp.float32)
    else:
        mask = jnp.asarray(mask, jnp.float32)
    contrast_count = n_views
    contrast_feature = jnp.concatenate([features[:, v] for v in range(n_views)], axis=0)
    if contrast_mode == 'one':
        anchor_feature = features[:, 0]
        anchor_count = 1
    else:
        anchor_feature = contrast_feature
        anchor_count = contrast_count
    adc = jax.lax.dot_general(anchor_feature.astype(matmul_dtype),
                              contrast_feature.astype(matmul_dtype),
                              (((1,), (1,)), ((), ())),
                              preferred_element_type=jnp.float32)
    if matmul_dtype == jnp.float32:
        adc = adc / temperature
    else:
        adc = adc * (1.0 / temperature)
    logits = adc - jnp.max(adc, axis=1, keepdims=True)
    mask = jnp.tile(mask, (anchor_count, contrast_count))
    n_anchor = anchor_count * bsz
    logits_mask = 1.0 - jnp.eye(n_anchor, mask.shape[1], dtype=jnp.float32)
    mask = mask * logits_mask
    exp_logits = jnp.exp(logits) * logits_mask
    log_prob = logits - jnp.log(jnp.sum(exp_logits, axis=1, keepdims=True))
    mean_log_prob_pos = jnp.sum(mask * log_prob, axis=1) / jnp.sum(mask, axis=1)
    loss = -(temperature / base_temperature) * mean_log_prob_pos
    return loss.reshape(anchor_count, bsz).mean()


if __name__ == "__main__":
    key = jax.random.PRNGKey(0)
    k1, k2 = jax.random.split(key)

    bsz, n_views, dim = 8, 2, 32
    feats = jax.random.normal(k1, (bsz, n_views, dim), dtype=jnp.float32)
    feats = feats / jnp.linalg.norm(feats, axis=-1, keepdims=True)
    labels = jax.random.randint(k2, (bsz,), 0, 3)
    explicit_mask = (labels[:, None] == labels[None, :]).astype(jnp.float32)

    cases = [
        ("supervised_all", dict(labels=labels, contrast_mode='all')),
        ("simclr_all", dict(labels=None, contrast_mode='all')),
        ("supervised_one", dict(labels=labels, contrast_mode='one')),
        ("explicit_mask_all", dict(mask=explicit_mask, contrast_mode='all')),
    ]

    ok = True
    for name, kw in cases:
        out = jax.block_until_ready(supcon_loss(feats, **kw))
        # Tight check against a reference that uses the same bf16-MXU matmul precision.
        ref_bf16 = _reference(feats, matmul_dtype=jnp.bfloat16, **kw)
        # Loose check against the exact float32 PyTorch semantics.
        ref_f32 = _reference(feats, matmul_dtype=jnp.float32, **kw)
        if not jnp.allclose(out, ref_bf16, atol=1e-4, rtol=1e-3):
            ok = False
            print(f"MISMATCH(bf16 ref) {name}: {out} vs {ref_bf16}")
        if not jnp.allclose(out, ref_f32, atol=2e-2, rtol=2e-2):
            ok = False
            print(f"MISMATCH(f32 ref)  {name}: {out} vs {ref_f32}")

    if ok:
        print("KERNEL_OK")
</pallas_src>

<mosaic_0001>
module attributes {stable_mosaic.version = 11 : i64} {
  func.func @_supcon_label_kernel(%arg0: i32, %arg1: memref<16x1xi32, #tpu.memory_space<vmem>>, %arg2: memref<16x128xbf16, #tpu.memory_space<vmem>>, %arg3: memref<1x16xi32, #tpu.memory_space<vmem>>, %arg4: memref<128x16xbf16, #tpu.memory_space<vmem>>, %arg5: memref<16x1xf32, #tpu.memory_space<vmem>>, %arg6: memref<16x1xf32, #tpu.memory_space<vmem>>) attributes {dimension_semantics = [#tpu.dimension_semantics<parallel>], iteration_bounds = array<i64: 1>, scalar_prefetch = 0 : i64, scratch_operands = 0 : i64, tpu.core_type = #tpu.core_type<tc>, window_params = [{transform_indices = @transform_0, window_bounds = array<i64: 16, 1>}, {transform_indices = @transform_1, window_bounds = array<i64: 16, 128>}, {pipeline_mode = #tpu.pipeline_mode<synchronous>, transform_indices = @transform_2, window_bounds = array<i64: 1, 16>}, {pipeline_mode = #tpu.pipeline_mode<synchronous>, transform_indices = @transform_3, window_bounds = array<i64: 128, 16>}, {transform_indices = @transform_4, window_bounds = array<i64: 16, 1>}, {transform_indices = @transform_5, window_bounds = array<i64: 16, 1>}]} {
    %c0 = arith.constant 0 : index
    %c0_0 = arith.constant 0 : index
    %0 = vector.load %arg2[%c0, %c0_0] : memref<16x128xbf16, #tpu.memory_space<vmem>>, vector<16x128xbf16>
    %c0_1 = arith.constant 0 : index
    %c0_2 = arith.constant 0 : index
    %1 = vector.load %arg4[%c0_1, %c0_2] : memref<128x16xbf16, #tpu.memory_space<vmem>>, vector<128x16xbf16>
    %cst = arith.constant dense<0.000000e+00> : vector<16x16xf32>
    %2 = tpu.matmul %0, %1, %cst {dimension_numbers = #tpu.dot_dimension_numbers<[1], [0], [0], [1], [0, 0, 1, 1], [], []>} : vector<16x128xbf16>, vector<128x16xbf16>, vector<16x16xf32> -> vector<16x16xf32>
    %cst_3 = arith.constant 14.2857141 : f32
    %3 = vector.broadcast %cst_3 : f32 to vector<16x16xf32>
    %4 = arith.mulf %2, %3 : vector<16x16xf32>
    %c16_i32 = arith.constant 16 : i32
    %5 = arith.muli %arg0, %c16_i32 : i32
    %6 = tpu.iota {dimensions = array<i32: 0>} : vector<16x16xi32>
    %7 = vector.broadcast %5 : i32 to vector<16x16xi32>
    %8 = arith.addi %7, %6 : vector<16x16xi32>
    %9 = tpu.iota {dimensions = array<i32: 1>} : vector<16x16xi32>
    %10 = arith.cmpi ne, %8, %9 : vector<16x16xi32>
    %cst_4 = arith.constant dense<0xFF800000> : vector<16xf32>
    %11 = vector.multi_reduction <maximumf>, %4, %cst_4 [1] : vector<16x16xf32> to vector<16xf32>
    %12 = vector.shape_cast %11 : vector<16xf32> to vector<16x1xf32>
    %13 = vector.broadcast %12 : vector<16x1xf32> to vector<16x16xf32>
    %14 = arith.subf %4, %13 : vector<16x16xf32>
    %15 = math.exp %14 : vector<16x16xf32>
    %cst_5 = arith.constant 0.000000e+00 : f32
    %16 = vector.broadcast %cst_5 : f32 to vector<16x16xf32>
    %17 = arith.select %10, %15, %16 : vector<16x16xi1>, vector<16x16xf32>
    %cst_6 = arith.constant dense<0.000000e+00> : vector<16xf32>
    %18 = vector.multi_reduction <add>, %17, %cst_6 [1] : vector<16x16xf32> to vector<16xf32>
    %19 = vector.shape_cast %18 : vector<16xf32> to vector<16x1xf32>
    %20 = math.log %19 : vector<16x1xf32>
    %21 = vector.broadcast %20 : vector<16x1xf32> to vector<16x16xf32>
    %22 = arith.subf %14, %21 : vector<16x16xf32>
    %c0_7 = arith.constant 0 : index
    %c0_8 = arith.constant 0 : index
    %23 = vector.load %arg1[%c0_7, %c0_8] : memref<16x1xi32, #tpu.memory_space<vmem>>, vector<16x1xi32>
    %c0_9 = arith.constant 0 : index
    %c0_10 = arith.constant 0 : index
    %24 = vector.load %arg3[%c0_9, %c0_10] : memref<1x16xi32, #tpu.memory_space<vmem>>, vector<1x16xi32>
    %25 = vector.broadcast %23 : vector<16x1xi32> to vector<16x16xi32>
    %26 = vector.broadcast %24 : vector<1x16xi32> to vector<16x16xi32>
    %27 = arith.cmpi eq, %25, %26 : vector<16x16xi32>
    %28 = arith.andi %27, %10 : vector<16x16xi1>
    %cst_11 = arith.constant 0.000000e+00 : f32
    %29 = vector.broadcast %cst_11 : f32 to vector<16x16xf32>
    %30 = arith.select %28, %22, %29 : vector<16x16xi1>, vector<16x16xf32>
    %cst_12 = arith.constant dense<0.000000e+00> : vector<16xf32>
    %31 = vector.multi_reduction <add>, %30, %cst_12 [1] : vector<16x16xf32> to vector<16xf32>
    %32 = vector.shape_cast %31 : vector<16xf32> to vector<16x1xf32>
    %c0_13 = arith.constant 0 : index
    %c0_14 = arith.constant 0 : index
    %33 = vector.load %arg5[%c0_13, %c0_14] : memref<16x1xf32, #tpu.memory_space<vmem>>, vector<16x1xf32>
    %34 = arith.divf %32, %33 : vector<16x1xf32>
    %cst_15 = arith.constant -1.000000e+00 : f32
    %35 = vector.broadcast %cst_15 : f32 to vector<16x1xf32>
    %36 = arith.mulf %35, %34 : vector<16x1xf32>
    %c0_16 = arith.constant 0 : index
    %c0_17 = arith.constant 0 : index
    %37 = vector.load %arg6[%c0_16, %c0_17] : memref<16x1xf32, #tpu.memory_space<vmem>>, vector<16x1xf32>
    tpu.vector_store %arg6[%c0_16, %c0_17], %36 {strides = array<i32>} : memref<16x1xf32, #tpu.memory_space<vmem>>, vector<16x1xf32>,
    return
  }
  func.func @transform_0(%arg0: i32) -> (i32, i32) {
    %c0_i32 = arith.constant 0 : i32
    %c0_i32_0 = arith.constant 0 : i32
    return %arg0, %c0_i32 : i32, i32
  }
  func.func @transform_1(%arg0: i32) -> (i32, i32) {
    %c0_i32 = arith.constant 0 : i32
    %c0_i32_0 = arith.constant 0 : i32
    return %arg0, %c0_i32 : i32, i32
  }
  func.func @transform_2(%arg0: i32) -> (i32, i32) {
    %c0_i32 = arith.constant 0 : i32
    %c0_i32_0 = arith.constant 0 : i32
    %c0_i32_1 = arith.constant 0 : i32
    return %c0_i32, %c0_i32_0 : i32, i32
  }
  func.func @transform_3(%arg0: i32) -> (i32, i32) {
    %c0_i32 = arith.constant 0 : i32
    %c0_i32_0 = arith.constant 0 : i32
    %c0_i32_1 = arith.constant 0 : i32
    return %c0_i32, %c0_i32_0 : i32, i32
  }
  func.func @transform_4(%arg0: i32) -> (i32, i32) {
    %c0_i32 = arith.constant 0 : i32
    %c0_i32_0 = arith.constant 0 : i32
    return %arg0, %c0_i32 : i32, i32
  }
  func.func @transform_5(%arg0: i32) -> (i32, i32) {
    %c0_i32 = arith.constant 0 : i32
    %c0_i32_0 = arith.constant 0 : i32
    return %arg0, %c0_i32 : i32, i32
  }
}

</mosaic_0001>

<bundles_post_ra>
// kernel: tpu_custom_call.1
= control target key start
LH: loop header
LB: loop body
LE: loop exit
PB: predicated region body
PF: predicated region fallthrough
CT: control target
= control target key end

     0   :  { %v279_v0 = vmov 0.0   ;;  %vm280_vm0 = vmmov 0   ;;  %vm147_vm1 = vcmask 130048   ;;  %v281_v18 = vmov 0   ;;  %s370_s3 = inlined_call_operand.vmem [shape: bf16[128,16], index: 3, kind: input, shape index: {}]   ;;  %s371_s1 = inlined_call_operand.vmem [shape: bf16[16,128], index: 1, kind: input, shape index: {}]   ;;  %s372_s0 = inlined_call_operand.vmem [shape: s32[16,1], index: 0, kind: input, shape index: {}]   ;;  %s373_s2 = inlined_call_operand.vmem [shape: s32[1,16], index: 2, kind: input, shape index: {}]   ;;  %s374_s4 = inlined_call_operand.vmem [shape: f32[16,1], index: 4, kind: input, shape index: {}]   ;;  %s375_s5 = inlined_call_operand.vmem [shape: f32[16,1], index: 5, kind: output, shape index: {}]  }
   0x1   :  { %233 = vmatprep.subr.bf16.mxu0 %v279_v0  ;;  %v258_v1 = vld [vmem:[%s370_s3] sm:$0xff]   ;;  %249 = vmatprep.mubr.msk.bf16.mxu0 %vm280_vm0, %v279_v0  ;;  %v259_v2 = vld [vmem:[%s370_s3 + $0x8] sm:$0xff]   ;;  %v260_v3 = vld [vmem:[%s370_s3 + $0x10] sm:$0xff]   ;;  %v137_v25 = vlaneseq  ;;  %vm207_vm8 = vcmask 7168  }
   0x2   :  { %234 = vmatpush3.bf16.msra.mxu0 %v258_v1  ;;  %v261_v4 = vld [vmem:[%s370_s3 + $0x18] sm:$0xff]   ;;  %v262_v5 = vld [vmem:[%s370_s3 + $0x20] sm:$0xff]   ;;  %v263_v6 = vld [vmem:[%s370_s3 + $0x28] sm:$0xff]   ;;  %256 = vset.pattern.permute.xlu0 %v281_v18 }
   0x3   :  { %235 = vmatprep.subr.bf16.mxu0 %v279_v0  ;;  %v264_v7 = vld [vmem:[%s370_s3 + $0x30] sm:$0xff]   ;;  %v265_v8 = vld [vmem:[%s370_s3 + $0x38] sm:$0xff]   ;;  %v266_v9 = vld [vmem:[%s371_s1] sm:$0xff]   ;;  %257 = vset.pattern.permute.xlu1 %v281_v18  ;;  %v138_v27 = vshrl.u32 %v137_v25, 7  ;;  %v144_v28 = vand.u32 127, %v137_v25 }
   0x4   :  { %v174_v19 = vld [vmem:[%s372_s0] sm:$0xff]  ;;  %v175_v36 = vld [vmem:[%s372_s0 + $0x8] sm:$0xff] }
   0x5   :  { %vm145_vm2 = vcmp.ne.s32.totalorder %v138_v27, %v144_v28  ;;  %v139_v29 = vadd.s32 8, %v138_v27  ;;  %v223_v39 = vld [vmem:[%s373_s2] ss:$0 sm:$0xff]  ;;  %v200_v53 = vld [vmem:[%s374_s4 + $0x8] sm:$0xff] }
   0x6   :  { %236 = vmatpush3.bf16.msra.mxu0 %v259_v2  ;;  %v199_v52 = vld [vmem:[%s374_s4] sm:$0xff] }
   0x7   :  { %237 = vmatprep.subr.bf16.mxu0 %v279_v0  ;;  %vm146_vm3 = vcmp.ne.s32.totalorder %v139_v29, %v144_v28 }
   0xa   :  { %238 = vmatpush3.bf16.msra.mxu0 %v260_v3 }
   0xb   :  { %239 = vmatprep.subr.bf16.mxu0 %v279_v0 }
   0xe   :  { %240 = vmatpush3.bf16.msra.mxu0 %v261_v4 }
   0xf   :  { %241 = vmatprep.subr.bf16.mxu0 %v279_v0 }
  0x12   :  { %242 = vmatpush3.bf16.msra.mxu0 %v262_v5 }
  0x13   :  { %243 = vmatprep.subr.bf16.mxu0 %v279_v0 }
  0x16   :  { %244 = vmatpush3.bf16.msra.mxu0 %v263_v6 }
  0x17   :  { %245 = vmatprep.subr.bf16.mxu0 %v279_v0 }
  0x1a   :  { %246 = vmatpush3.bf16.msra.mxu0 %v264_v7 }
  0x1b   :  { %247 = vmatprep.subr.bf16.mxu0 %v279_v0 }
  0x1e   :  { %248 = vmatpush3.bf16.msra.mxu0 %v265_v8 }
  0x21   :  { %250 = vmatmul.mubr.bf16.vlgmr.msra.gmra.mrb[0].mxu0 %v266_v9 }
  0xf4   :  { %v127_v10 = vpop.f32.mrb[0].mxu0 }
  0xf5   :  { %v134_v11 = vmul.f32 14.285714, %v127_v10  ;;  %v251_v12 = vpop.f32.mrb[1].mxu0 }
  0xf6   :  { %v130_v13 = vpop.f32.mrb[2].mxu0 }
  0xf7   :  { %v135_v14 = vmul.f32 14.285714, %v130_v13  ;;  %v252_v15 = vpop.f32.mrb[3].mxu0  ;;  %v148_v16 = vsel %vm147_vm1, %v134_v11, -inf }
  0xf8   :  { %149 = vmax.xlane.f32.xlu0 %v148_v16 }
  0xf9   :  { %v151_v17 = vsel %vm147_vm1, %v135_v14, -inf }
  0xfc   :  { %152 = vmax.xlane.f32.xlu0 %v151_v17 }
 0x112   :  { %178 = vperm.xlu0 %256, %v174_v19  }
 0x185   :  { %v150_v20 = vpop.xlane.xlu0 %149 }
 0x186   :  { %v154_v21 = vsub.f32 %v134_v11, %v150_v20 }
 0x188   :  { %v156_v22 = vmul.f32 1.442695, %v154_v21 }
 0x189   :  { %v153_v23 = vpop.xlane.xlu0 %152 }
 0x18a   :  { %267 = vpow2.f32 %v156_v22  ;;  %v155_v24 = vsub.f32 %v135_v14, %v153_v23 }
 0x18c   :  { %v158_v26 = vmul.f32 1.442695, %v155_v24 }
 0x18e   :  { %269 = vpow2.f32 %v158_v26 }
 0x191   :  { %v179_v40 = vpop.permute.xlu0 %178 }
 0x192   :  { %vm187_vm4 = vcmp.eq.s32.totalorder %v179_v40, %v223_v39 }
 0x193   :  { %vm189_vm5 = vmand %vm187_vm4, %vm145_vm2 }
 0x194   :  { %v268_v30 = vpop.eup %267 }
 0x195   :  { %v160_v31 = vsel %vm145_vm2, %v268_v30, 0.0 }
 0x196   :  { %v162_v32 = vsel %vm147_vm1, %v160_v31, 0.0 }
 0x197   :  { %163 = vadd.xlane.f32.xlu1 %v162_v32 }
 0x198   :  { %v270_v33 = vpop.eup %269 }
 0x199   :  { %v161_v34 = vsel %vm146_vm3, %v270_v33, 0.0 }
 0x19a   :  { %v165_v35 = vsel %vm147_vm1, %v161_v34, 0.0 }
 0x19b   :  { %166 = vadd.xlane.f32.xlu1 %v165_v35 }
 0x1ac   :  { %181 = vperm.xlu1 %257, %v175_v36  }
 0x224   :  { %v164_v37 = vpop.xlane.xlu1 %163 }
 0x225   :  { %271 = vlog2.f32 %v164_v37 }
 0x228   :  { %v167_v38 = vpop.xlane.xlu1 %166 }
 0x229   :  { %273 = vlog2.f32 %v167_v38 }
 0x22a   :  { %275 = vrcp.f32 %v199_v52 }
 0x22b   :  { %277 = vrcp.f32 %v200_v53 }
 0x22c   :  { %v182_v42 = vpop.permute.xlu1 %181 }
 0x22d   :  { %vm188_vm6 = vcmp.eq.s32.totalorder %v182_v42, %v223_v39 }
 0x22e   :  { %vm190_vm7 = vmand %vm188_vm6, %vm146_vm3 }
 0x22f   :  { %v272_v41 = vpop.eup %271 }
 0x230   :  { %v169_v43 = vmul.f32 0.6931472, %v272_v41 }
 0x232   :  { %v172_v44 = vsub.f32 %v154_v21, %v169_v43 }
 0x233   :  { %v274_v45 = vpop.eup %273 }
 0x234   :  { %v171_v46 = vmul.f32 0.6931472, %v274_v45  ;;  %v191_v47 = vsel %vm189_vm5, %v172_v44, 0.0  ;;  %v276_v54 = vpop.eup %275 }
 0x235   :  { %v193_v48 = vsel %vm147_vm1, %v191_v47, 0.0  ;;  %v278_v57 = vpop.eup %277 }
 0x236   :  { %194 = vadd.xlane.f32.xlu1 %v193_v48  ;;  %v173_v49 = vsub.f32 %v155_v24, %v171_v46 }
 0x238   :  { %v192_v50 = vsel %vm190_vm7, %v173_v49, 0.0 }
 0x239   :  { %v196_v51 = vsel %vm147_vm1, %v192_v50, 0.0 }
 0x23a   :  { %197 = vadd.xlane.f32.xlu0 %v196_v51 }
 0x2c3   :  { %v195_v55 = vpop.xlane.xlu1 %194 }
 0x2c4   :  { %v202_v56 = vmul.f32 %v276_v54, %v195_v55 }
 0x2c6   :  { %v205_v58 = vmul.f32 -1.0, %v202_v56 }
 0x2c7   :  { %v198_v59 = vpop.xlane.xlu0 %197 }
 0x2c8   :  { %208 = vst.msk [vmem:[%s375_s5] sm:$0xff] %vm207_vm8, %v205_v58  ;;  %v204_v60 = vmul.f32 %v278_v57, %v198_v59 }
 0x2ca   :  { %v206_v61 = vmul.f32 -1.0, %v204_v60 }
 0x2cc   :  { %209 = vst.msk [vmem:[%s375_s5 + $0x8] sm:$0xff] %vm207_vm8, %v206_v61 }

</bundles_post_ra>
